<compile_context>
chip_gen: v7x
topology: tpu7x:2x2x1
jax: 0.10.0
libtpu: 0.0.40
codegen_flags: <defaults>
</compile_context>

<pallas_src>
import jax
import jax.numpy as jnp
from jax import lax
from jax.experimental import pallas as pl
from jax.experimental.pallas import tpu as pltpu

LANE = 128     # lane tiling (last dim)
SUBLANE = 8    # sublane tiling (second-to-last dim)
TT_MAX = 64    # max timesteps processed per grid step (fully unrolled in-kernel)
BT_MAX = 128   # max batch rows per batch tile (per-core tile on v7x)


def _round_up(n, m):
    return ((n + m - 1) // m) * m


@jax.jit
def rnn_forward(x, h_state, W_ih, W_hh, b_ih, b_hh, W_lin, b_lin):
    """x: (B, T, inputSize), h_state: (1, B, hiddenSize) -> out: (B, 1)."""
    B, T, I = x.shape
    H = W_ih.shape[0]
    O = W_lin.shape[0]          # = 1

    f32 = jnp.float32
    cdt = jnp.bfloat16          # MXU operand dtype (f32 accumulate)

    # ---- padded / tiled sizes -------------------------------------------
    Bp = _round_up(B, SUBLANE)
    if Bp <= BT_MAX:
        BT = Bp
    else:
        BT = BT_MAX
        Bp = _round_up(Bp, BT)
    NB = Bp // BT

    Ip = _round_up(I, LANE)
    Hp = _round_up(H, LANE)
    Op = _round_up(O, LANE)

    TT = min(T, TT_MAX)
    Tpad = _round_up(T, TT)
    NC = Tpad // TT

    # ---- host-side parameter prep (zero padding is mathematically inert) ---
    WihT = jnp.zeros((Ip, Hp), f32).at[:I, :H].set(W_ih.T.astype(f32)).astype(cdt)
    WhhT = jnp.zeros((Hp, Hp), f32).at[:H, :H].set(W_hh.T.astype(f32)).astype(cdt)
    b = jnp.zeros((1, Hp), f32).at[0, :H].set((b_ih + b_hh).astype(f32))
    WlT = jnp.zeros((Hp, Op), f32).at[:H, :O].set(W_lin.T.astype(f32)).astype(cdt)
    bl = jnp.zeros((1, Op), f32).at[0, :O].set(b_lin.astype(f32))

    # Time-major, padded, and pre-blocked so each grid step reads one
    # lane/sublane-dense (TT*BT, Ip) slab with no in-kernel reshape.
    xt = jnp.swapaxes(x, 0, 1).astype(f32)                       # (T, B, I)
    xt = jnp.pad(xt, ((0, Tpad - T), (0, Bp - B), (0, Ip - I)))  # (Tpad, Bp, Ip)
    xt = xt.reshape(NC, TT, NB, BT, Ip)
    xt = jnp.transpose(xt, (0, 2, 1, 3, 4))                      # (NC, NB, TT, BT, Ip)
    xt = xt.reshape(NC, NB, TT * BT, Ip).astype(cdt)

    h0 = jnp.pad(h_state[0].astype(f32), ((0, Bp - B), (0, Hp - H)))  # (Bp, Hp)

    # ---- kernel ----------------------------------------------------------
    def rnn_kernel(x_ref, h0_ref, wih_ref, whh_ref, b_ref, wl_ref, bl_ref,
                   out_ref, h_scr):
        """One grid step == TT timesteps for one batch tile.

        x_ref  : (1, 1, TT*BT, Ip)  bf16   chunk of inputs for this (bi, ci)
        h0_ref : (BT, Hp)           f32    initial hidden state (resident)
        wih_ref: (Ip, Hp)           bf16   W_ih^T                (resident)
        whh_ref: (Hp, Hp)           bf16   W_hh^T                (resident)
        b_ref  : (1, Hp)            f32    b_ih + b_hh           (resident)
        wl_ref : (Hp, Op)           bf16   linear weight^T       (resident)
        bl_ref : (1, Op)            f32    linear bias           (resident)
        out_ref: (BT, Op)           f32    written only on the last time chunk
        h_scr  : (BT, Hp) VMEM      f32    hidden-state carry across chunks
        """
        c = pl.program_id(1)   # time-chunk index (innermost / "arbitrary")

        @pl.when(c == 0)
        def _init():
            h_scr[...] = h0_ref[...]

        # Batched input projection for the whole chunk: one big MXU matmul,
        # bias broadcast hoisted out of the per-step loop.
        x2 = x_ref[0, 0]                                          # (TT*BT, Ip)
        xw = jnp.dot(x2, wih_ref[...],
                     preferred_element_type=jnp.float32) + b_ref[...]

        whh = whh_ref[...]                                        # (Hp, Hp) bf16
        h = h_scr[...]                                            # (BT, Hp) f32

        # Fully unrolled time loop (equivalent to lax.fori_loop(..., unroll=True));
        # static Python indices keep the xw slices free and h lives in vregs.
        for t in range(TT):
            pre = xw[t * BT:(t + 1) * BT] + jnp.dot(
                h.astype(cdt), whh, preferred_element_type=jnp.float32)
            h_new = jnp.tanh(pre)
            if Tpad != T:  # mask zero-padded timesteps in the last chunk
                h_new = jnp.where(c * TT + t < T, h_new, h)
            h = h_new

        h_scr[...] = h

        # out = Linear(h_T): only the final hidden state is needed.
        @pl.when(c == pl.num_programs(1) - 1)
        def _finish():
            out_ref[...] = bl_ref[...] + jnp.dot(
                h.astype(cdt), wl_ref[...], preferred_element_type=jnp.float32)

    grid_spec = pltpu.PrefetchScalarGridSpec(
        num_scalar_prefetch=0,
        grid=(NB, NC),
        in_specs=[
            pl.BlockSpec((1, 1, TT * BT, Ip), lambda bi, ci: (ci, bi, 0, 0)),
            pl.BlockSpec((BT, Hp), lambda bi, ci: (bi, 0)),       # h0
            pl.BlockSpec((Ip, Hp), lambda bi, ci: (0, 0)),        # W_ih^T (resident)
            pl.BlockSpec((Hp, Hp), lambda bi, ci: (0, 0)),        # W_hh^T (resident)
            pl.BlockSpec((1, Hp), lambda bi, ci: (0, 0)),         # fused bias
            pl.BlockSpec((Hp, Op), lambda bi, ci: (0, 0)),        # linear W^T
            pl.BlockSpec((1, Op), lambda bi, ci: (0, 0)),         # linear bias
        ],
        out_specs=pl.BlockSpec((BT, Op), lambda bi, ci: (bi, 0)),
        scratch_shapes=[pltpu.VMEM((BT, Hp), f32)],
    )

    out_padded = pl.pallas_call(
        rnn_kernel,
        out_shape=jax.ShapeDtypeStruct((Bp, Op), f32),
        grid_spec=grid_spec,
        compiler_params=pltpu.CompilerParams(
            # batch tiles are independent (can split across v7x's 2 TCs);
            # the time recurrence is sequential.
            dimension_semantics=("parallel", "arbitrary"),
            vmem_limit_bytes=32 * 1024 * 1024,
        ),
    )(xt, h0, WihT, WhhT, b, WlT, bl)

    return out_padded[:B, :O]


def rnn_ref(x, h_state, W_ih, W_hh, b_ih, b_hh, W_lin, b_lin,
            op_dtype=jnp.float32):
    """Pure-JAX reference mirroring torch nn.RNN(tanh) + Linear(H, 1).

    With op_dtype=bf16 it applies the same operand-precision policy as the
    kernel (bf16 MXU operands, f32 accumulation / tanh / hidden carry).
    """
    h0 = h_state[0].astype(jnp.float32)
    WihT = W_ih.T.astype(op_dtype)
    WhhT = W_hh.T.astype(op_dtype)
    WlT = W_lin.T.astype(op_dtype)
    b = (b_ih + b_hh).astype(jnp.float32)
    xs = jnp.swapaxes(x, 0, 1).astype(op_dtype)      # (T, B, I)

    def step(h, x_t):
        pre = (jnp.dot(x_t, WihT, preferred_element_type=jnp.float32)
               + jnp.dot(h.astype(op_dtype), WhhT,
                         preferred_element_type=jnp.float32)
               + b)
        return jnp.tanh(pre), None

    h_T, _ = lax.scan(step, h0, xs)
    return (jnp.dot(h_T.astype(op_dtype), WlT,
                    preferred_element_type=jnp.float32)
            + b_lin.astype(jnp.float32))


if __name__ == "__main__":
    input_size = 16
    hidden_size = 4      # hiddenSize in the reference script
    num_layers = 1       # numLayers in the reference script
    batch = 4
    seq_len = 8

    key = jax.random.PRNGKey(0)
    k_wih, k_whh, k_bih, k_bhh, k_wl, k_bl, k_x, k_h = jax.random.split(key, 8)

    # Deterministic synthetic parameters (nn.RNN / nn.Linear shapes).
    W_ih = jax.random.uniform(k_wih, (hidden_size, input_size), jnp.float32, -0.5, 0.5)
    W_hh = jax.random.uniform(k_whh, (hidden_size, hidden_size), jnp.float32, -0.5, 0.5)
    b_ih = jax.random.uniform(k_bih, (hidden_size,), jnp.float32, -0.5, 0.5)
    b_hh = jax.random.uniform(k_bhh, (hidden_size,), jnp.float32, -0.5, 0.5)
    W_lin = jax.random.uniform(k_wl, (1, hidden_size), jnp.float32, -0.5, 0.5)
    b_lin = jax.random.uniform(k_bl, (1,), jnp.float32, -0.5, 0.5)

    x = jax.random.normal(k_x, (batch, seq_len, input_size), dtype=jnp.float32)
    h_state = jax.random.normal(k_h, (num_layers, batch, hidden_size),
                                dtype=jnp.float32)

    out = rnn_forward(x, h_state, W_ih, W_hh, b_ih, b_hh, W_lin, b_lin)
    jax.block_until_ready(out)
    assert out.shape == (batch, 1), out.shape

    # Tight check against a reference using the same bf16 operand policy.
    ref_bf16 = rnn_ref(x, h_state, W_ih, W_hh, b_ih, b_hh, W_lin, b_lin,
                       op_dtype=jnp.bfloat16)
    assert jnp.allclose(out, ref_bf16, atol=2e-3, rtol=2e-3), (out, ref_bf16)

    # Loose check against the full-f32 (PyTorch-semantics) reference;
    # slack accounts for bf16 MXU operands in the kernel.
    ref_f32 = rnn_ref(x, h_state, W_ih, W_hh, b_ih, b_hh, W_lin, b_lin,
                      op_dtype=jnp.float32)
    assert jnp.allclose(out, ref_f32, atol=5e-2, rtol=5e-2), (out, ref_f32)

    print("KERNEL_OK")
</pallas_src>

<mosaic_0001>
module attributes {stable_mosaic.version = 11 : i64} {
  func.func @rnn_kernel(%arg0: i32, %arg1: i32, %arg2: memref<1x1x64x128xbf16, #tpu.memory_space<vmem>>, %arg3: memref<8x128xf32, #tpu.memory_space<vmem>>, %arg4: memref<128x128xbf16, #tpu.memory_space<vmem>>, %arg5: memref<128x128xbf16, #tpu.memory_space<vmem>>, %arg6: memref<1x128xf32, #tpu.memory_space<vmem>>, %arg7: memref<128x128xbf16, #tpu.memory_space<vmem>>, %arg8: memref<1x128xf32, #tpu.memory_space<vmem>>, %arg9: memref<8x128xf32, #tpu.memory_space<vmem>>, %arg10: memref<8x128xf32, #tpu.memory_space<vmem>>) attributes {dimension_semantics = [#tpu.dimension_semantics<parallel>, #tpu.dimension_semantics<arbitrary>], iteration_bounds = array<i64: 1, 1>, scalar_prefetch = 0 : i64, scratch_operands = 1 : i64, tpu.core_type = #tpu.core_type<tc>, window_params = [{transform_indices = @transform_0, window_bounds = array<i64: 1, 1, 64, 128>}, {transform_indices = @transform_1, window_bounds = array<i64: 8, 128>}, {pipeline_mode = #tpu.pipeline_mode<synchronous>, transform_indices = @transform_2, window_bounds = array<i64: 128, 128>}, {pipeline_mode = #tpu.pipeline_mode<synchronous>, transform_indices = @transform_3, window_bounds = array<i64: 128, 128>}, {pipeline_mode = #tpu.pipeline_mode<synchronous>, transform_indices = @transform_4, window_bounds = array<i64: 1, 128>}, {pipeline_mode = #tpu.pipeline_mode<synchronous>, transform_indices = @transform_5, window_bounds = array<i64: 128, 128>}, {pipeline_mode = #tpu.pipeline_mode<synchronous>, transform_indices = @transform_6, window_bounds = array<i64: 1, 128>}, {transform_indices = @transform_7, window_bounds = array<i64: 8, 128>}]} {
    %c0_i32 = arith.constant 0 : i32
    %0 = arith.cmpi eq, %arg1, %c0_i32 : i32
    %1 = arith.extui %0 : i1 to i32
    %c0_i32_0 = arith.constant 0 : i32
    %2 = arith.cmpi ne, %1, %c0_i32_0 : i32
    scf.if %2 {
      %c0_24 = arith.constant 0 : index
      %c0_25 = arith.constant 0 : index
      %56 = vector.load %arg3[%c0_24, %c0_25] : memref<8x128xf32, #tpu.memory_space<vmem>>, vector<8x128xf32>
      %c0_26 = arith.constant 0 : index
      %c0_27 = arith.constant 0 : index
      %57 = vector.load %arg10[%c0_26, %c0_27] : memref<8x128xf32, #tpu.memory_space<vmem>>, vector<8x128xf32>
      tpu.vector_store %arg10[%c0_26, %c0_27], %56 {strides = array<i32>} : memref<8x128xf32, #tpu.memory_space<vmem>>, vector<8x128xf32>,
    } else {
    }
    %c0 = arith.constant 0 : index
    %c0_1 = arith.constant 0 : index
    %c0_2 = arith.constant 0 : index
    %c0_3 = arith.constant 0 : index
    %3 = vector.load %arg2[%c0, %c0_1, %c0_2, %c0_3] : memref<1x1x64x128xbf16, #tpu.memory_space<vmem>>, vector<1x1x64x128xbf16>
    %4 = vector.shape_cast %3 : vector<1x1x64x128xbf16> to vector<64x128xbf16>
    %c0_4 = arith.constant 0 : index
    %c0_5 = arith.constant 0 : index
    %5 = vector.load %arg4[%c0_4, %c0_5] : memref<128x128xbf16, #tpu.memory_space<vmem>>, vector<128x128xbf16>
    %cst = arith.constant dense<0.000000e+00> : vector<64x128xf32>
    %6 = tpu.matmul %4, %5, %cst {dimension_numbers = #tpu.dot_dimension_numbers<[1], [0], [0], [1], [0, 0, 1, 1], [], []>} : vector<64x128xbf16>, vector<128x128xbf16>, vector<64x128xf32> -> vector<64x128xf32>
    %c0_6 = arith.constant 0 : index
    %c0_7 = arith.constant 0 : index
    %7 = vector.load %arg6[%c0_6, %c0_7] : memref<1x128xf32, #tpu.memory_space<vmem>>, vector<1x128xf32>
    %8 = vector.broadcast %7 : vector<1x128xf32> to vector<64x128xf32>
    %9 = arith.addf %6, %8 : vector<64x128xf32>
    %c0_8 = arith.constant 0 : index
    %c0_9 = arith.constant 0 : index
    %10 = vector.load %arg5[%c0_8, %c0_9] : memref<128x128xbf16, #tpu.memory_space<vmem>>, vector<128x128xbf16>
    %c0_10 = arith.constant 0 : index
    %c0_11 = arith.constant 0 : index
    %11 = vector.load %arg10[%c0_10, %c0_11] : memref<8x128xf32, #tpu.memory_space<vmem>>, vector<8x128xf32>
    %12 = vector.extract_strided_slice %9 {offsets = [0, 0], sizes = [8, 128], strides = [1, 1]} : vector<64x128xf32> to vector<8x128xf32>
    %13 = arith.truncf %11 : vector<8x128xf32> to vector<8x128xbf16>
    %cst_12 = arith.constant dense<0.000000e+00> : vector<8x128xf32>
    %14 = tpu.matmul %13, %10, %cst_12 {dimension_numbers = #tpu.dot_dimension_numbers<[1], [0], [0], [1], [0, 0, 1, 1], [], []>} : vector<8x128xbf16>, vector<128x128xbf16>, vector<8x128xf32> -> vector<8x128xf32>
    %15 = arith.addf %12, %14 : vector<8x128xf32>
    %16 = math.tanh %15 : vector<8x128xf32>
    %17 = vector.extract_strided_slice %9 {offsets = [8, 0], sizes = [8, 128], strides = [1, 1]} : vector<64x128xf32> to vector<8x128xf32>
    %18 = arith.truncf %16 : vector<8x128xf32> to vector<8x128xbf16>
    %cst_13 = arith.constant dense<0.000000e+00> : vector<8x128xf32>
    %19 = tpu.matmul %18, %10, %cst_13 {dimension_numbers = #tpu.dot_dimension_numbers<[1], [0], [0], [1], [0, 0, 1, 1], [], []>} : vector<8x128xbf16>, vector<128x128xbf16>, vector<8x128xf32> -> vector<8x128xf32>
    %20 = arith.addf %17, %19 : vector<8x128xf32>
    %21 = math.tanh %20 : vector<8x128xf32>
    %22 = vector.extract_strided_slice %9 {offsets = [16, 0], sizes = [8, 128], strides = [1, 1]} : vector<64x128xf32> to vector<8x128xf32>
    %23 = arith.truncf %21 : vector<8x128xf32> to vector<8x128xbf16>
    %cst_14 = arith.constant dense<0.000000e+00> : vector<8x128xf32>
    %24 = tpu.matmul %23, %10, %cst_14 {dimension_numbers = #tpu.dot_dimension_numbers<[1], [0], [0], [1], [0, 0, 1, 1], [], []>} : vector<8x128xbf16>, vector<128x128xbf16>, vector<8x128xf32> -> vector<8x128xf32>
    %25 = arith.addf %22, %24 : vector<8x128xf32>
    %26 = math.tanh %25 : vector<8x128xf32>
    %27 = vector.extract_strided_slice %9 {offsets = [24, 0], sizes = [8, 128], strides = [1, 1]} : vector<64x128xf32> to vector<8x128xf32>
    %28 = arith.truncf %26 : vector<8x128xf32> to vector<8x128xbf16>
    %cst_15 = arith.constant dense<0.000000e+00> : vector<8x128xf32>
    %29 = tpu.matmul %28, %10, %cst_15 {dimension_numbers = #tpu.dot_dimension_numbers<[1], [0], [0], [1], [0, 0, 1, 1], [], []>} : vector<8x128xbf16>, vector<128x128xbf16>, vector<8x128xf32> -> vector<8x128xf32>
    %30 = arith.addf %27, %29 : vector<8x128xf32>
    %31 = math.tanh %30 : vector<8x128xf32>
    %32 = vector.extract_strided_slice %9 {offsets = [32, 0], sizes = [8, 128], strides = [1, 1]} : vector<64x128xf32> to vector<8x128xf32>
    %33 = arith.truncf %31 : vector<8x128xf32> to vector<8x128xbf16>
    %cst_16 = arith.constant dense<0.000000e+00> : vector<8x128xf32>
    %34 = tpu.matmul %33, %10, %cst_16 {dimension_numbers = #tpu.dot_dimension_numbers<[1], [0], [0], [1], [0, 0, 1, 1], [], []>} : vector<8x128xbf16>, vector<128x128xbf16>, vector<8x128xf32> -> vector<8x128xf32>
    %35 = arith.addf %32, %34 : vector<8x128xf32>
    %36 = math.tanh %35 : vector<8x128xf32>
    %37 = vector.extract_strided_slice %9 {offsets = [40, 0], sizes = [8, 128], strides = [1, 1]} : vector<64x128xf32> to vector<8x128xf32>
    %38 = arith.truncf %36 : vector<8x128xf32> to vector<8x128xbf16>
    %cst_17 = arith.constant dense<0.000000e+00> : vector<8x128xf32>
    %39 = tpu.matmul %38, %10, %cst_17 {dimension_numbers = #tpu.dot_dimension_numbers<[1], [0], [0], [1], [0, 0, 1, 1], [], []>} : vector<8x128xbf16>, vector<128x128xbf16>, vector<8x128xf32> -> vector<8x128xf32>
    %40 = arith.addf %37, %39 : vector<8x128xf32>
    %41 = math.tanh %40 : vector<8x128xf32>
    %42 = vector.extract_strided_slice %9 {offsets = [48, 0], sizes = [8, 128], strides = [1, 1]} : vector<64x128xf32> to vector<8x128xf32>
    %43 = arith.truncf %41 : vector<8x128xf32> to vector<8x128xbf16>
    %cst_18 = arith.constant dense<0.000000e+00> : vector<8x128xf32>
    %44 = tpu.matmul %43, %10, %cst_18 {dimension_numbers = #tpu.dot_dimension_numbers<[1], [0], [0], [1], [0, 0, 1, 1], [], []>} : vector<8x128xbf16>, vector<128x128xbf16>, vector<8x128xf32> -> vector<8x128xf32>
    %45 = arith.addf %42, %44 : vector<8x128xf32>
    %46 = math.tanh %45 : vector<8x128xf32>
    %47 = vector.extract_strided_slice %9 {offsets = [56, 0], sizes = [8, 128], strides = [1, 1]} : vector<64x128xf32> to vector<8x128xf32>
    %48 = arith.truncf %46 : vector<8x128xf32> to vector<8x128xbf16>
    %cst_19 = arith.constant dense<0.000000e+00> : vector<8x128xf32>
    %49 = tpu.matmul %48, %10, %cst_19 {dimension_numbers = #tpu.dot_dimension_numbers<[1], [0], [0], [1], [0, 0, 1, 1], [], []>} : vector<8x128xbf16>, vector<128x128xbf16>, vector<8x128xf32> -> vector<8x128xf32>
    %50 = arith.addf %47, %49 : vector<8x128xf32>
    %51 = math.tanh %50 : vector<8x128xf32>
    %c0_20 = arith.constant 0 : index
    %c0_21 = arith.constant 0 : index
    %52 = vector.load %arg10[%c0_20, %c0_21] : memref<8x128xf32, #tpu.memory_space<vmem>>, vector<8x128xf32>
    tpu.vector_store %arg10[%c0_20, %c0_21], %51 {strides = array<i32>} : memref<8x128xf32, #tpu.memory_space<vmem>>, vector<8x128xf32>,
    %c0_i32_22 = arith.constant 0 : i32
    %53 = arith.cmpi eq, %arg1, %c0_i32_22 : i32
    %54 = arith.extui %53 : i1 to i32
    %c0_i32_23 = arith.constant 0 : i32
    %55 = arith.cmpi ne, %54, %c0_i32_23 : i32
    scf.if %55 {
      %c0_24 = arith.constant 0 : index
      %c0_25 = arith.constant 0 : index
      %56 = vector.load %arg8[%c0_24, %c0_25] : memref<1x128xf32, #tpu.memory_space<vmem>>, vector<1x128xf32>
      %57 = arith.truncf %51 : vector<8x128xf32> to vector<8x128xbf16>
      %c0_26 = arith.constant 0 : index
      %c0_27 = arith.constant 0 : index
      %58 = vector.load %arg7[%c0_26, %c0_27] : memref<128x128xbf16, #tpu.memory_space<vmem>>, vector<128x128xbf16>
      %cst_28 = arith.constant dense<0.000000e+00> : vector<8x128xf32>
      %59 = tpu.matmul %57, %58, %cst_28 {dimension_numbers = #tpu.dot_dimension_numbers<[1], [0], [0], [1], [0, 0, 1, 1], [], []>} : vector<8x128xbf16>, vector<128x128xbf16>, vector<8x128xf32> -> vector<8x128xf32>
      %60 = vector.broadcast %56 : vector<1x128xf32> to vector<8x128xf32>
      %61 = arith.addf %60, %59 : vector<8x128xf32>
      %c0_29 = arith.constant 0 : index
      %c0_30 = arith.constant 0 : index
      %62 = vector.load %arg9[%c0_29, %c0_30] : memref<8x128xf32, #tpu.memory_space<vmem>>, vector<8x128xf32>
      tpu.vector_store %arg9[%c0_29, %c0_30], %61 {strides = array<i32>} : memref<8x128xf32, #tpu.memory_space<vmem>>, vector<8x128xf32>,
    } else {
    }
    return
  }
  func.func @transform_0(%arg0: i32, %arg1: i32) -> (i32, i32, i32, i32) {
    %c0_i32 = arith.constant 0 : i32
    %c0_i32_0 = arith.constant 0 : i32
    %c0_i32_1 = arith.constant 0 : i32
    return %arg1, %arg0, %c0_i32, %c0_i32_0 : i32, i32, i32, i32
  }
  func.func @transform_1(%arg0: i32, %arg1: i32) -> (i32, i32) {
    %c0_i32 = arith.constant 0 : i32
    %c0_i32_0 = arith.constant 0 : i32
    return %arg0, %c0_i32 : i32, i32
  }
  func.func @transform_2(%arg0: i32, %arg1: i32) -> (i32, i32) {
    %c0_i32 = arith.constant 0 : i32
    %c0_i32_0 = arith.constant 0 : i32
    %c0_i32_1 = arith.constant 0 : i32
    return %c0_i32, %c0_i32_0 : i32, i32
  }
  func.func @transform_3(%arg0: i32, %arg1: i32) -> (i32, i32) {
    %c0_i32 = arith.constant 0 : i32
    %c0_i32_0 = arith.constant 0 : i32
    %c0_i32_1 = arith.constant 0 : i32
    return %c0_i32, %c0_i32_0 : i32, i32
  }
  func.func @transform_4(%arg0: i32, %arg1: i32) -> (i32, i32) {
    %c0_i32 = arith.constant 0 : i32
    %c0_i32_0 = arith.constant 0 : i32
    %c0_i32_1 = arith.constant 0 : i32
    return %c0_i32, %c0_i32_0 : i32, i32
  }
  func.func @transform_5(%arg0: i32, %arg1: i32) -> (i32, i32) {
    %c0_i32 = arith.constant 0 : i32
    %c0_i32_0 = arith.constant 0 : i32
    %c0_i32_1 = arith.constant 0 : i32
    return %c0_i32, %c0_i32_0 : i32, i32
  }
  func.func @transform_6(%arg0: i32, %arg1: i32) -> (i32, i32) {
    %c0_i32 = arith.constant 0 : i32
    %c0_i32_0 = arith.constant 0 : i32
    %c0_i32_1 = arith.constant 0 : i32
    return %c0_i32, %c0_i32_0 : i32, i32
  }
  func.func @transform_7(%arg0: i32, %arg1: i32) -> (i32, i32) {
    %c0_i32 = arith.constant 0 : i32
    %c0_i32_0 = arith.constant 0 : i32
    return %arg0, %c0_i32 : i32, i32
  }
}

</mosaic_0001>

<bundles_post_ra>
// kernel: rnn_forward.1
= control target key start
LH: loop header
LB: loop body
LE: loop exit
PB: predicated region body
PF: predicated region fallthrough
CT: control target
= control target key end

     0   :  { %v1105_v1 = vmov 0.0   ;;  %vm1106_vm0 = vmmov 0   ;;  %s1438_s2 = inlined_call_operand.vmem [shape: bf16[128,128], index: 2, kind: input, shape index: {}]   ;;  %s1439_s3 = inlined_call_operand.vmem [shape: bf16[128,128], index: 3, kind: input, shape index: {}]   ;;  %s1440_s0 = inlined_call_operand.vmem [shape: bf16[1,1,64,128], index: 0, kind: input, shape index: {}]   ;;  %s1441_s1 = inlined_call_operand.vmem [shape: f32[8,128], index: 1, kind: input, shape index: {}]   ;;  %s1442_s4 = inlined_call_operand.vmem [shape: f32[1,128], index: 4, kind: input, shape index: {}]   ;;  %s1443_s5 = inlined_call_operand.vmem [shape: bf16[128,128], index: 5, kind: input, shape index: {}]   ;;  %s1444_s6 = inlined_call_operand.vmem [shape: f32[1,128], index: 6, kind: input, shape index: {}]   ;;  %s1445_s7 = inlined_call_operand.vmem [shape: f32[8,128], index: 7, kind: output, shape index: {}]  }
   0x1   :  { %v1061_v0 = vld [vmem:[%s1438_s2] sm:$0xff]   ;;  %879 = vmatprep.subr.bf16.mxu1 %v1105_v1  ;;  %895 = vmatprep.mubr.msk.bf16.mxu1 %vm1106_vm0, %v1105_v1  ;;  %v1063_v3 = vld [vmem:[%s1438_s2 + $0x8] sm:$0xff]   ;;  %v1065_v5 = vld [vmem:[%s1438_s2 + $0x10] sm:$0xff]  }
   0x2   :  { %v1156_v2 = vld [vmem:[%s1439_s3] sm:$0xff]   ;;  %855 = vmatprep.subr.bf16.mxu0 %v1061_v0  ;;  %v1165_v4 = vld [vmem:[%s1439_s3 + $0x8] sm:$0xff]   ;;  %v1175_v6 = vld [vmem:[%s1439_s3 + $0x10] sm:$0xff]  }
   0x3   :  { %856 = vmatpush3.bf16.msra.mxu0 %v1061_v0  ;;  %880 = vmatpush3.bf16.msra.mxu1 %v1156_v2  ;;  %v1067_v7 = vld [vmem:[%s1438_s2 + $0x18] sm:$0xff]   ;;  %v1069_v9 = vld [vmem:[%s1438_s2 + $0x20] sm:$0xff]   ;;  %v1071_v11 = vld [vmem:[%s1438_s2 + $0x28] sm:$0xff]  }
   0x4   :  { %857 = vmatprep.subr.bf16.mxu0 %v1063_v3  ;;  %881 = vmatprep.subr.bf16.mxu1 %v1105_v1  ;;  %v1185_v8 = vld [vmem:[%s1439_s3 + $0x18] sm:$0xff]   ;;  %v1194_v10 = vld [vmem:[%s1439_s3 + $0x20] sm:$0xff]   ;;  %v1208_v13 = vld [vmem:[%s1439_s3 + $0x28] sm:$0xff]  }
   0x5   :  { %v1077_v12 = vld [vmem:[%s1440_s0] sm:$0xff]   ;;  %v1073_v14 = vld [vmem:[%s1438_s2 + $0x30] sm:$0xff]   ;;  %v1075_v16 = vld [vmem:[%s1438_s2 + $0x38] sm:$0xff]  }
   0x6   :  { %871 = vmatprep.mubr.bf16.mxu0 %v1077_v12  ;;  %v1218_v15 = vld [vmem:[%s1439_s3 + $0x30] sm:$0xff]   ;;  %v1228_v17 = vld [vmem:[%s1439_s3 + $0x38] sm:$0xff]   ;;  %v31_v18 = vld [vmem:[%s1441_s1] sm:$0xff] }
   0x7   :  { %858 = vmatpush3.bf16.msra.mxu0 %v1063_v3  ;;  %882 = vmatpush3.bf16.msra.mxu1 %v1165_v4  ;;  %v1078_v19 = vld [vmem:[%s1440_s0 + $0x8] sm:$0xff]   ;;  %v218_v20 = vpack.c.bf16 %v31_v18, %v31_v18  ;;  %v1079_v21 = vld [vmem:[%s1440_s0 + $0x10] sm:$0xff]   ;;  %v1080_v22 = vld [vmem:[%s1440_s0 + $0x18] sm:$0xff]  }
   0x8   :  { %859 = vmatprep.subr.bf16.mxu0 %v1065_v5  ;;  %883 = vmatprep.subr.bf16.mxu1 %v1105_v1  ;;  %v1285_v23 = vld [vmem:[%s1442_s4] ss:$0 sm:$0xff] }
   0xb   :  { %860 = vmatpush3.bf16.msra.mxu0 %v1065_v5  ;;  %884 = vmatpush3.bf16.msra.mxu1 %v1175_v6 }
   0xc   :  { %861 = vmatprep.subr.bf16.mxu0 %v1067_v7  ;;  %885 = vmatprep.subr.bf16.mxu1 %v1105_v1 }
   0xf   :  { %862 = vmatpush3.bf16.msra.mxu0 %v1067_v7  ;;  %886 = vmatpush3.bf16.msra.mxu1 %v1185_v8 }
  0x10   :  { %863 = vmatprep.subr.bf16.mxu0 %v1069_v9  ;;  %887 = vmatprep.subr.bf16.mxu1 %v1105_v1 }
  0x13   :  { %864 = vmatpush3.bf16.msra.mxu0 %v1069_v9  ;;  %888 = vmatpush3.bf16.msra.mxu1 %v1194_v10 }
  0x14   :  { %865 = vmatprep.subr.bf16.mxu0 %v1071_v11  ;;  %889 = vmatprep.subr.bf16.mxu1 %v1105_v1 }
  0x17   :  { %866 = vmatpush3.bf16.msra.mxu0 %v1071_v11  ;;  %890 = vmatpush3.bf16.msra.mxu1 %v1208_v13 }
  0x18   :  { %867 = vmatprep.subr.bf16.mxu0 %v1073_v14  ;;  %891 = vmatprep.subr.bf16.mxu1 %v1105_v1 }
  0x1b   :  { %868 = vmatpush3.bf16.msra.mxu0 %v1073_v14  ;;  %892 = vmatpush3.bf16.msra.mxu1 %v1218_v15 }
  0x1c   :  { %869 = vmatprep.subr.bf16.mxu0 %v1075_v16  ;;  %893 = vmatprep.subr.bf16.mxu1 %v1105_v1 }
  0x1f   :  { %870 = vmatpush3.bf16.msra.mxu0 %v1075_v16  ;;  %894 = vmatpush3.bf16.msra.mxu1 %v1228_v17 }
  0x20   :  { %899 = vmatprep.subr.bf16.mxu0 %v1105_v1  ;;  %919 = vmatprep.subr.bf16.mxu1 %v1105_v1 }
  0x22   :  { %872 = vmatmul.mubr.bf16.vlgmr.msra.gmra.mrb[0].mxu0 %v1078_v19  ;;  %896 = vmatmul.mubr.bf16.vlgmr.msra.gmra.mrb[0].mxu1 %v218_v20  ;;  %v1084_v20 = vld [vmem:[%s1443_s5 + $0x18] sm:$0xff]  }
  0x23   :  { %900 = vmatpush3.bf16.msra.mxu0 %v1156_v2  ;;  %920 = vmatpush3.bf16.msra.mxu1 %v1156_v2 }
  0x24   :  { %901 = vmatprep.subr.bf16.mxu0 %v1105_v1  ;;  %921 = vmatprep.subr.bf16.mxu1 %v1105_v1 }
  0x25   :  { %935 = vmatprep.mubr.msk.bf16.mxu1 %vm1106_vm0, %v1105_v1  ;;  %875 = vmatprep.mubr.bf16.mxu0 %v1079_v21 }
  0x27   :  { %902 = vmatpush3.bf16.msra.mxu0 %v1165_v4  ;;  %922 = vmatpush3.bf16.msra.mxu1 %v1165_v4 }
  0x28   :  { %903 = vmatprep.subr.bf16.mxu0 %v1105_v1  ;;  %923 = vmatprep.subr.bf16.mxu1 %v1105_v1 }
  0x2a   :  { %876 = vmatmul.mubr.bf16.gmra.mrb[4].mxu0 %v1080_v22 }
  0x2b   :  { %904 = vmatpush3.bf16.msra.mxu0 %v1175_v6  ;;  %924 = vmatpush3.bf16.msra.mxu1 %v1175_v6 }
  0x2c   :  { %905 = vmatprep.subr.bf16.mxu0 %v1105_v1  ;;  %925 = vmatprep.subr.bf16.mxu1 %v1105_v1 }
  0x2d   :  { %915 = vmatprep.mubr.msk.bf16.mxu0 %vm1106_vm0, %v1105_v1 }
  0x2f   :  { %906 = vmatpush3.bf16.msra.mxu0 %v1185_v8  ;;  %926 = vmatpush3.bf16.msra.mxu1 %v1185_v8 }
  0x30   :  { %907 = vmatprep.subr.bf16.mxu0 %v1105_v1  ;;  %927 = vmatprep.subr.bf16.mxu1 %v1105_v1 }
  0x33   :  { %908 = vmatpush3.bf16.msra.mxu0 %v1194_v10  ;;  %928 = vmatpush3.bf16.msra.mxu1 %v1194_v10 }
  0x34   :  { %909 = vmatprep.subr.bf16.mxu0 %v1105_v1  ;;  %929 = vmatprep.subr.bf16.mxu1 %v1105_v1 }
  0x37   :  { %910 = vmatpush3.bf16.msra.mxu0 %v1208_v13  ;;  %930 = vmatpush3.bf16.msra.mxu1 %v1208_v13 }
  0x38   :  { %911 = vmatprep.subr.bf16.mxu0 %v1105_v1  ;;  %931 = vmatprep.subr.bf16.mxu1 %v1105_v1 }
  0x3b   :  { %912 = vmatpush3.bf16.msra.mxu0 %v1218_v15  ;;  %932 = vmatpush3.bf16.msra.mxu1 %v1218_v15 }
  0x3c   :  { %913 = vmatprep.subr.bf16.mxu0 %v1105_v1  ;;  %933 = vmatprep.subr.bf16.mxu1 %v1105_v1 }
  0x3f   :  { %914 = vmatpush3.bf16.msra.mxu0 %v1228_v17  ;;  %934 = vmatpush3.bf16.msra.mxu1 %v1228_v17 }
  0x40   :  { %939 = vmatprep.subr.bf16.mxu0 %v1105_v1  ;;  %959 = vmatprep.subr.bf16.mxu1 %v1105_v1 }
  0xf5   :  { %v873_v24 = vpop.f32.mrb[0].mxu0  ;;  %v301_v25 = vpop.f32.mrb[0].mxu1 }
  0xf6   :  { %v170_v26 = vpop.f32.mrb[1].mxu0  ;;  %v897_v27 = vpop.f32.mrb[1].mxu1  ;;  %v179_v48 = vadd.f32 %v873_v24, %v1285_v23 }
  0xf7   :  { %v171_v28 = vadd.f32 %v1285_v23, %v170_v26  ;;  %v1288_v29 = vpop.f32.mrb[2].mxu0  ;;  %v304_v30 = vpop.f32.mrb[2].mxu1 }
  0xf8   :  { %v173_v31 = vpop.f32.mrb[3].mxu0  ;;  %v898_v32 = vpop.f32.mrb[3].mxu1  ;;  %v182_v56 = vadd.f32 %v1288_v29, %v1285_v23  ;;  %v1085_v30 = vld [vmem:[%s1443_s5 + $0x20] sm:$0xff]  }
  0xf9   :  { %v307_v33 = vadd.f32 %v301_v25, %v171_v28  ;;  %v174_v40 = vadd.f32 %v1285_v23, %v173_v31  ;;  %v1086_v31 = vld [vmem:[%s1443_s5 + $0x28] sm:$0xff]   ;;  %v1087_v32 = vld [vmem:[%s1443_s5 + $0x30] sm:$0xff]  }
  0xfb   :  { %1089 = vtanh.f32 %v307_v33  ;;  %v1088_v33 = vld [vmem:[%s1443_s5 + $0x38] sm:$0xff]  }
  0xfd   :  { %v1308_v36 = vpop.f32.mrb[4].mxu0 }
  0xfe   :  { %v1310_v37 = vpop.f32.mrb[5].mxu0  ;;  %v195_v21 = vadd.f32 %v1308_v36, %v1285_v23 }
  0xff   :  { %v1312_v38 = vpop.f32.mrb[6].mxu0  ;;  %v187_v0 = vadd.f32 %v1285_v23, %v1310_v37 }
 0x100   :  { %v1314_v39 = vpop.f32.mrb[7].mxu0 }
 0x105   :  { %v1090_v34 = vpop.eup %1089 }
 0x106   :  { %v309_v35 = vpack.c.bf16 %v1090_v34, %v1090_v34  ;;  %v198_v34 = vadd.f32 %v1312_v38, %v1285_v23 }
 0x108   :  { %916 = vmatmul.mubr.bf16.vlgmr.msra.gmra.mrb[8].mxu0 %v309_v35 }
 0x109   :  { %940 = vmatpush3.bf16.msra.mxu0 %v1156_v2  ;;  %955 = vmatprep.mubr.msk.bf16.mxu0 %vm1106_vm0, %v1105_v1 }
 0x10a   :  { %941 = vmatprep.subr.bf16.mxu0 %v1105_v1 }
 0x10d   :  { %942 = vmatpush3.bf16.msra.mxu0 %v1165_v4 }
 0x10e   :  { %943 = vmatprep.subr.bf16.mxu0 %v1105_v1 }
 0x111   :  { %944 = vmatpush3.bf16.msra.mxu0 %v1175_v6 }
 0x112   :  { %945 = vmatprep.subr.bf16.mxu0 %v1105_v1 }
 0x115   :  { %946 = vmatpush3.bf16.msra.mxu0 %v1185_v8 }
 0x116   :  { %947 = vmatprep.subr.bf16.mxu0 %v1105_v1 }
 0x119   :  { %948 = vmatpush3.bf16.msra.mxu0 %v1194_v10 }
 0x11a   :  { %949 = vmatprep.subr.bf16.mxu0 %v1105_v1 }
 0x11d   :  { %950 = vmatpush3.bf16.msra.mxu0 %v1208_v13 }
 0x11e   :  { %951 = vmatprep.subr.bf16.mxu0 %v1105_v1 }
 0x121   :  { %952 = vmatpush3.bf16.msra.mxu0 %v1218_v15 }
 0x122   :  { %953 = vmatprep.subr.bf16.mxu0 %v1105_v1 }
 0x125   :  { %954 = vmatpush3.bf16.msra.mxu0 %v1228_v17 }
 0x126   :  { %979 = vmatprep.subr.bf16.mxu0 %v1105_v1 }
 0x1db   :  { %v344_v41 = vpop.f32.mrb[8].mxu0 }
 0x1dc   :  { %v350_v42 = vadd.f32 %v344_v41, %v174_v40  ;;  %v917_v43 = vpop.f32.mrb[9].mxu0 }
 0x1dd   :  { %v347_v44 = vpop.f32.mrb[10].mxu0 }
 0x1de   :  { %1091 = vtanh.f32 %v350_v42  ;;  %v918_v45 = vpop.f32.mrb[11].mxu0 }
 0x1e8   :  { %v1092_v46 = vpop.eup %1091 }
 0x1e9   :  { %v352_v47 = vpack.c.bf16 %v1092_v46, %v1092_v46 }
 0x1eb   :  { %936 = vmatmul.mubr.bf16.vlgmr.msra.gmra.mrb[4].mxu1 %v352_v47 }
 0x1ec   :  { %960 = vmatpush3.bf16.msra.mxu1 %v1156_v2  ;;  %975 = vmatprep.mubr.msk.bf16.mxu1 %vm1106_vm0, %v1105_v1 }
 0x1ed   :  { %961 = vmatprep.subr.bf16.mxu1 %v1105_v1 }
 0x1f0   :  { %962 = vmatpush3.bf16.msra.mxu1 %v1165_v4 }
 0x1f1   :  { %963 = vmatprep.subr.bf16.mxu1 %v1105_v1 }
 0x1f4   :  { %964 = vmatpush3.bf16.msra.mxu1 %v1175_v6 }
 0x1f5   :  { %965 = vmatprep.subr.bf16.mxu1 %v1105_v1 }
 0x1f8   :  { %966 = vmatpush3.bf16.msra.mxu1 %v1185_v8 }
 0x1f9   :  { %967 = vmatprep.subr.bf16.mxu1 %v1105_v1 }
 0x1fc   :  { %968 = vmatpush3.bf16.msra.mxu1 %v1194_v10 }
 0x1fd   :  { %969 = vmatprep.subr.bf16.mxu1 %v1105_v1 }
 0x200   :  { %970 = vmatpush3.bf16.msra.mxu1 %v1208_v13 }
 0x201   :  { %971 = vmatprep.subr.bf16.mxu1 %v1105_v1 }
 0x204   :  { %972 = vmatpush3.bf16.msra.mxu1 %v1218_v15 }
 0x205   :  { %973 = vmatprep.subr.bf16.mxu1 %v1105_v1 }
 0x208   :  { %974 = vmatpush3.bf16.msra.mxu1 %v1228_v17 }
 0x209   :  { %999 = vmatprep.subr.bf16.mxu1 %v1105_v1 }
 0x2be   :  { %v387_v49 = vpop.f32.mrb[4].mxu1 }
 0x2bf   :  { %v393_v50 = vadd.f32 %v387_v49, %v179_v48  ;;  %v937_v51 = vpop.f32.mrb[5].mxu1 }
 0x2c0   :  { %v390_v52 = vpop.f32.mrb[6].mxu1 }
 0x2c1   :  { %1093 = vtanh.f32 %v393_v50  ;;  %v938_v53 = vpop.f32.mrb[7].mxu1 }
 0x2cb   :  { %v1094_v54 = vpop.eup %1093 }
 0x2cc   :  { %v395_v55 = vpack.c.bf16 %v1094_v54, %v1094_v54 }
 0x2ce   :  { %956 = vmatmul.mubr.bf16.vlgmr.msra.gmra.mrb[12].mxu0 %v395_v55 }
 0x2cf   :  { %980 = vmatpush3.bf16.msra.mxu0 %v1156_v2  ;;  %995 = vmatprep.mubr.msk.bf16.mxu0 %vm1106_vm0, %v1105_v1 }
 0x2d0   :  { %981 = vmatprep.subr.bf16.mxu0 %v1105_v1 }
 0x2d3   :  { %982 = vmatpush3.bf16.msra.mxu0 %v1165_v4 }
 0x2d4   :  { %983 = vmatprep.subr.bf16.mxu0 %v1105_v1 }
 0x2d7   :  { %984 = vmatpush3.bf16.msra.mxu0 %v1175_v6 }
 0x2d8   :  { %985 = vmatprep.subr.bf16.mxu0 %v1105_v1 }
 0x2db   :  { %986 = vmatpush3.bf16.msra.mxu0 %v1185_v8 }
 0x2dc   :  { %987 = vmatprep.subr.bf16.mxu0 %v1105_v1 }
 0x2df   :  { %988 = vmatpush3.bf16.msra.mxu0 %v1194_v10 }
 0x2e0   :  { %989 = vmatprep.subr.bf16.mxu0 %v1105_v1 }
 0x2e3   :  { %990 = vmatpush3.bf16.msra.mxu0 %v1208_v13 }
 0x2e4   :  { %991 = vmatprep.subr.bf16.mxu0 %v1105_v1 }
 0x2e7   :  { %992 = vmatpush3.bf16.msra.mxu0 %v1218_v15 }
 0x2e8   :  { %993 = vmatprep.subr.bf16.mxu0 %v1105_v1 }
 0x2eb   :  { %994 = vmatpush3.bf16.msra.mxu0 %v1228_v17 }
 0x2ec   :  { %1019 = vmatprep.subr.bf16.mxu0 %v1105_v1 }
 0x3a1   :  { %v430_v57 = vpop.f32.mrb[12].mxu0 }
 0x3a2   :  { %v436_v58 = vadd.f32 %v430_v57, %v182_v56  ;;  %v957_v59 = vpop.f32.mrb[13].mxu0 }
 0x3a3   :  { %v433_v60 = vpop.f32.mrb[14].mxu0 }
 0x3a4   :  { %1095 = vtanh.f32 %v436_v58  ;;  %v958_v61 = vpop.f32.mrb[15].mxu0 }
 0x3ae   :  { %v1096_v62 = vpop.eup %1095 }
 0x3af   :  { %v438_v63 = vpack.c.bf16 %v1096_v62, %v1096_v62 }
 0x3b1   :  { %976 = vmatmul.mubr.bf16.vlgmr.msra.gmra.mrb[8].mxu1 %v438_v63 }
 0x3b2   :  { %1000 = vmatpush3.bf16.msra.mxu1 %v1156_v2  ;;  %1015 = vmatprep.mubr.msk.bf16.mxu1 %vm1106_vm0, %v1105_v1 }
 0x3b3   :  { %1001 = vmatprep.subr.bf16.mxu1 %v1105_v1 }
 0x3b6   :  { %1002 = vmatpush3.bf16.msra.mxu1 %v1165_v4 }
 0x3b7   :  { %1003 = vmatprep.subr.bf16.mxu1 %v1105_v1 }
 0x3ba   :  { %1004 = vmatpush3.bf16.msra.mxu1 %v1175_v6 }
 0x3bb   :  { %1005 = vmatprep.subr.bf16.mxu1 %v1105_v1 }
 0x3be   :  { %1006 = vmatpush3.bf16.msra.mxu1 %v1185_v8 }
 0x3bf   :  { %1007 = vmatprep.subr.bf16.mxu1 %v1105_v1 }
 0x3c2   :  { %1008 = vmatpush3.bf16.msra.mxu1 %v1194_v10 }
 0x3c3   :  { %1009 = vmatprep.subr.bf16.mxu1 %v1105_v1 }
 0x3c6   :  { %1010 = vmatpush3.bf16.msra.mxu1 %v1208_v13 }
 0x3c7   :  { %1011 = vmatprep.subr.bf16.mxu1 %v1105_v1 }
 0x3ca   :  { %1012 = vmatpush3.bf16.msra.mxu1 %v1218_v15 }
 0x3cb   :  { %1013 = vmatprep.subr.bf16.mxu1 %v1105_v1 }
 0x3ce   :  { %1014 = vmatpush3.bf16.msra.mxu1 %v1228_v17 }
 0x3cf   :  { %1039 = vmatprep.subr.bf16.mxu1 %v1105_v1 }
 0x484   :  { %v473_v3 = vpop.f32.mrb[8].mxu1 }
 0x485   :  { %v479_v5 = vadd.f32 %v473_v3, %v187_v0  ;;  %v977_v7 = vpop.f32.mrb[9].mxu1 }
 0x486   :  { %v476_v9 = vpop.f32.mrb[10].mxu1 }
 0x487   :  { %1097 = vtanh.f32 %v479_v5  ;;  %v978_v11 = vpop.f32.mrb[11].mxu1 }
 0x491   :  { %v1098_v12 = vpop.eup %1097 }
 0x492   :  { %v481_v14 = vpack.c.bf16 %v1098_v12, %v1098_v12 }
 0x494   :  { %996 = vmatmul.mubr.bf16.vlgmr.msra.gmra.mrb[16].mxu0 %v481_v14 }
 0x495   :  { %1020 = vmatpush3.bf16.msra.mxu0 %v1156_v2  ;;  %1035 = vmatprep.mubr.msk.bf16.mxu0 %vm1106_vm0, %v1105_v1  ;;  %v190_v2 = vadd.f32 %v1285_v23, %v1314_v39 }
 0x496   :  { %1021 = vmatprep.subr.bf16.mxu0 %v1105_v1 }
 0x499   :  { %1022 = vmatpush3.bf16.msra.mxu0 %v1165_v4 }
 0x49a   :  { %1023 = vmatprep.subr.bf16.mxu0 %v1105_v1 }
 0x49d   :  { %1024 = vmatpush3.bf16.msra.mxu0 %v1175_v6 }
 0x49e   :  { %1025 = vmatprep.subr.bf16.mxu0 %v1105_v1 }
 0x4a1   :  { %1026 = vmatpush3.bf16.msra.mxu0 %v1185_v8 }
 0x4a2   :  { %1027 = vmatprep.subr.bf16.mxu0 %v1105_v1 }
 0x4a5   :  { %1028 = vmatpush3.bf16.msra.mxu0 %v1194_v10 }
 0x4a6   :  { %1029 = vmatprep.subr.bf16.mxu0 %v1105_v1 }
 0x4a9   :  { %1030 = vmatpush3.bf16.msra.mxu0 %v1208_v13  ;;  %v1081_v13 = vld [vmem:[%s1443_s5] sm:$0xff]  }
 0x4aa   :  { %1031 = vmatprep.subr.bf16.mxu0 %v1105_v1 }
 0x4ad   :  { %1032 = vmatpush3.bf16.msra.mxu0 %v1218_v15  ;;  %v1082_v15 = vld [vmem:[%s1443_s5 + $0x8] sm:$0xff]  }
 0x4ae   :  { %1033 = vmatprep.subr.bf16.mxu0 %v1105_v1 }
 0x4b1   :  { %1034 = vmatpush3.bf16.msra.mxu0 %v1228_v17  ;;  %v1083_v17 = vld [vmem:[%s1443_s5 + $0x10] sm:$0xff]  }
 0x567   :  { %v516_v4 = vpop.f32.mrb[16].mxu0 }
 0x568   :  { %v522_v6 = vadd.f32 %v516_v4, %v190_v2  ;;  %v997_v8 = vpop.f32.mrb[17].mxu0 }
 0x569   :  { %v519_v16 = vpop.f32.mrb[18].mxu0 }
 0x56a   :  { %1099 = vtanh.f32 %v522_v6  ;;  %v998_v10 = vpop.f32.mrb[19].mxu0 }
 0x574   :  { %v1100_v18 = vpop.eup %1099 }
 0x575   :  { %v524_v19 = vpack.c.bf16 %v1100_v18, %v1100_v18 }
 0x577   :  { %1016 = vmatmul.mubr.bf16.vlgmr.msra.gmra.mrb[12].mxu1 %v524_v19 }
 0x578   :  { %1055 = vmatprep.mubr.msk.bf16.mxu1 %vm1106_vm0, %v1105_v1  ;;  %1040 = vmatpush3.bf16.msra.mxu1 %v1081_v13 }
 0x579   :  { %1041 = vmatprep.subr.bf16.mxu1 %v1105_v1 }
 0x57c   :  { %1042 = vmatpush3.bf16.msra.mxu1 %v1082_v15 }
 0x57d   :  { %1043 = vmatprep.subr.bf16.mxu1 %v1105_v1 }
 0x580   :  { %1044 = vmatpush3.bf16.msra.mxu1 %v1083_v17 }
 0x581   :  { %1045 = vmatprep.subr.bf16.mxu1 %v1105_v1 }
 0x584   :  { %1046 = vmatpush3.bf16.msra.mxu1 %v1084_v20 }
 0x585   :  { %1047 = vmatprep.subr.bf16.mxu1 %v1105_v1 }
 0x588   :  { %1048 = vmatpush3.bf16.msra.mxu1 %v1085_v30 }
 0x589   :  { %1049 = vmatprep.subr.bf16.mxu1 %v1105_v1 }
 0x58c   :  { %1050 = vmatpush3.bf16.msra.mxu1 %v1086_v31 }
 0x58d   :  { %1051 = vmatprep.subr.bf16.mxu1 %v1105_v1 }
 0x590   :  { %1052 = vmatpush3.bf16.msra.mxu1 %v1087_v32 }
 0x591   :  { %1053 = vmatprep.subr.bf16.mxu1 %v1105_v1  ;;  %v761_v1 = vld [vmem:[%s1444_s6] ss:$0 sm:$0xff] }
 0x594   :  { %1054 = vmatpush3.bf16.msra.mxu1 %v1088_v33 }
 0x64a   :  { %v559_v22 = vpop.f32.mrb[12].mxu1 }
 0x64b   :  { %v565_v24 = vadd.f32 %v559_v22, %v195_v21  ;;  %v1017_v25 = vpop.f32.mrb[13].mxu1 }
 0x64c   :  { %v562_v26 = vpop.f32.mrb[14].mxu1 }
 0x64d   :  { %1101 = vtanh.f32 %v565_v24  ;;  %v1018_v27 = vpop.f32.mrb[15].mxu1 }
 0x657   :  { %v1102_v28 = vpop.eup %1101 }
 0x658   :  { %v567_v29 = vpack.c.bf16 %v1102_v28, %v1102_v28 }
 0x65a   :  { %1036 = vmatmul.mubr.bf16.vlgmr.msra.gmra.mrb[20].mxu0 %v567_v29 }
 0x72d   :  { %v602_v35 = vpop.f32.mrb[20].mxu0 }
 0x72e   :  { %v608_v36 = vadd.f32 %v602_v35, %v198_v34  ;;  %v1037_v37 = vpop.f32.mrb[21].mxu0 }
 0x72f   :  { %v605_v39 = vpop.f32.mrb[22].mxu0 }
 0x730   :  { %1103 = vtanh.f32 %v608_v36  ;;  %v1038_v40 = vpop.f32.mrb[23].mxu0 }
 0x73a   :  { %v1104_v41 = vpop.eup %1103 }
 0x73b   :  { %v615_v42 = vpack.c.bf16 %v1104_v41, %v1104_v41 }
 0x73d   :  { %1056 = vmatmul.mubr.bf16.vlgmr.msra.gmra.mrb[16].mxu1 %v615_v42 }
 0x810   :  { %v714_v43 = vpop.f32.mrb[16].mxu1 }
 0x811   :  { %v726_v44 = vadd.f32 %v761_v1, %v714_v43  ;;  %v1057_v45 = vpop.f32.mrb[17].mxu1 }
 0x812   :  { %v717_v46 = vpop.f32.mrb[18].mxu1 }
 0x813   :  { %727 = vst [vmem:[%s1445_s7] sm:$0xff] %v726_v44  ;;  %v1058_v23 = vpop.f32.mrb[19].mxu1 }

</bundles_post_ra>
